<compile_context>
chip_gen: v7x
topology: tpu7x:2x2x1
jax: 0.10.0
libtpu: 0.0.40
codegen_flags: <defaults>
</compile_context>

<pallas_src>
import functools
import math

import jax
import jax.numpy as jnp
from jax.experimental import pallas as pl
from jax.experimental.pallas import tpu as pltpu


def _bgo_kernel(flags_ref, x0_ref, x1_ref, x2_ref, out_ref, *, logit_eps):
    # Grid = (B*C, spatial tiles). flags_ref is the per-row (B*C,) channel mask in
    # SMEM; each tile belongs to exactly one channel, so the branch is a scalar
    # pl.when (no per-element select, no mask column in VMEM).
    i = pl.program_id(0)
    flag = flags_ref[i]

    @pl.when(flag != 0)
    def _():
        x0 = x0_ref[0, 0].astype(jnp.float32)          # (tile_rows, lanes) logit_p
        x1 = x1_ref[0, 0].astype(jnp.float32)          # log_alpha
        x2 = x2_ref[0, 0].astype(jnp.float32)          # log_beta
        # Exact sigmoid: kernel is HBM-bound on all generations, so the extra EUP/VPU
        # work is free and keeps accuracy at the reference level.
        p = 1.0 / (1.0 + jnp.exp(-x0))
        mean = p * jnp.exp(x1 - x2)
        # sigmoid(x0) < eps  <=>  x0 < logit(eps); compile-time scalar threshold, and
        # the zeroing mask never depends on how the sigmoid was rounded.
        mean = jnp.where(x0 < logit_eps, 0.0, mean)
        out_ref[0] = mean.astype(out_ref.dtype)

    @pl.when(flag == 0)
    def _():
        # Pass-through channel: out = logit_p plane. x1/x2 blocks are pinned to a
        # constant index by their index_maps, so their DMAs are skipped on revisits
        # and no transcendentals are issued.
        out_ref[0] = x0_ref[0, 0]


def _round_up(x, m):
    return ((x + m - 1) // m) * m


def _spatial_tiling(n, lane_tile=1024, row_tile=512, sublane=8):
    """Fold flat spatial size n into (rows, lanes, tile_rows, n_pad).

    Guarantees: n_pad == rows * lanes >= n; lanes is a multiple of 128 (or == n when
    n happens to be an exact small multiple); tile_rows divides rows and is a multiple
    of `sublane` (or equals rows when rows < sublane); tile_rows <= row_tile and
    lanes <= lane_tile, so the per-step VMEM footprint is always bounded.
    """
    # 1) Exact, pad-free factorization if one exists.
    start = min(lane_tile, n)
    start -= start % 128
    for lanes in range(start, 0, -128):
        if n % lanes:
            continue
        rows = n // lanes
        if rows <= row_tile and (rows % sublane == 0 or rows <= sublane):
            return rows, lanes, rows, n
        if rows > row_tile:
            for tr in range(row_tile - row_tile % sublane, 0, -sublane):
                if rows % tr == 0:
                    return rows, lanes, tr, n
    # 2) Padded lane-dense layout (any n; padding < sublane*lanes elements).
    lanes = min(lane_tile, _round_up(n, 128))
    rows = _round_up(-(-n // lanes), sublane)
    cap = min(row_tile, rows)
    tile_rows = rows  # rows is a multiple of sublane, so the loop below always hits.
    for tr in range(cap - cap % sublane, 0, -sublane):
        if rows % tr == 0:
            tile_rows = tr
            break
    return rows, lanes, tile_rows, rows * lanes


def bernoulli_gamma_forward(x, positive_output_mask, eps=1e-9,
                            lane_tile=1024, row_tile=512):
    """Forward pass of BernoulliGammaOutput.

    x: (B, C, 3, H, W); param axis = [logit_p, log_alpha, log_beta].
    positive_output_mask: (C,) bool.
    Returns (B, C, H, W) in x.dtype.
    """
    B, C, K, H, W = x.shape
    assert K == 3
    M, N = B * C, H * W
    dtype = x.dtype
    itemsize = jnp.dtype(dtype).itemsize
    sublane = 16 if itemsize == 2 else 8          # bf16/fp16 pack (16,128) per vreg

    rows, lanes, tile_rows, n_pad = _spatial_tiling(N, lane_tile, row_tile, sublane)

    # Contiguous (free) reshape; pad the flat spatial axis only when N has no clean
    # lane-dense factorization (pad region computes garbage that is sliced off).
    x_flat = x.reshape(M, 3, N)
    if n_pad != N:
        x_flat = jnp.pad(x_flat, ((0, 0), (0, 0), (0, n_pad - N)))
    x_fused = x_flat.reshape(M, 3, rows, lanes)

    # Per-row channel flag (int32, SMEM via scalar prefetch): row i is channel i % C.
    flags = jnp.tile(positive_output_mask.astype(jnp.int32), B)

    grid = (M, rows // tile_rows)
    # TODO(synk): on v7x, if B*C is odd and rows//tile_rows == 1 one TensorCore idles;
    # splitting the spatial axis into >=2 tiles per row would rebalance.

    # Explicit VMEM budget: 3 input plane blocks + 1 output block, double-buffered,
    # plus headroom — keeps v5e's 16 MiB default scoped limit from being exceeded
    # silently and lets v6e/v7x run the 512x1024 tile.
    block_bytes = tile_rows * lanes * itemsize
    vmem_limit_bytes = 2 * 4 * block_bytes + (8 << 20)

    out_elems = M * N
    cost = pl.CostEstimate(
        flops=6 * out_elems,
        transcendentals=2 * out_elems,
        bytes_accessed=(3 + 1) * M * n_pad * itemsize,
    )

    logit_eps = math.log(eps) - math.log1p(-eps)
    kernel = functools.partial(_bgo_kernel, logit_eps=logit_eps)

    plane_block = (1, 1, tile_rows, lanes)
    out = pl.pallas_call(
        kernel,
        out_shape=jax.ShapeDtypeStruct((M, rows, lanes), dtype),
        grid_spec=pltpu.PrefetchScalarGridSpec(
            num_scalar_prefetch=1,            # (B*C,) channel flags live in SMEM
            grid=grid,
            in_specs=[
                # logit_p plane: always fetched.
                pl.BlockSpec(plane_block, lambda i, j, f: (i, 0, j, 0)),
                # log_alpha / log_beta planes: pinned to block (0, ., 0, 0) for
                # pass-through rows so their DMAs are skipped on revisits.
                pl.BlockSpec(plane_block,
                             lambda i, j, f: (i * f[i], 1, j * f[i], 0)),
                pl.BlockSpec(plane_block,
                             lambda i, j, f: (i * f[i], 2, j * f[i], 0)),
            ],
            out_specs=pl.BlockSpec((1, tile_rows, lanes),
                                   lambda i, j, f: (i, j, 0)),
        ),
        compiler_params=pltpu.CompilerParams(
            dimension_semantics=("parallel", "parallel"),
            vmem_limit_bytes=vmem_limit_bytes),
        cost_estimate=cost,
    )(flags, x_fused, x_fused, x_fused)

    out = out.reshape(M, n_pad)
    if n_pad != N:
        out = out[:, :N]
    return out.reshape(B, C, H, W)


def _reference_forward(x, positive_output_mask, eps=1e-9):
    x0 = x[:, :, 0]
    xf = x.astype(jnp.float32)
    p = jax.nn.sigmoid(xf[:, :, 0])
    mean = p * jnp.exp(xf[:, :, 1] - xf[:, :, 2])
    mean = jnp.where(p < eps, 0.0, mean).astype(x.dtype)
    m = positive_output_mask.astype(bool)[None, :, None, None]
    return jnp.where(m, mean, x0)


if __name__ == "__main__":
    B, C, H, W = 2, 4, 16, 16
    key = jax.random.PRNGKey(0)
    x = jax.random.normal(key, (B, C, 3, H, W), dtype=jnp.float32)

    # Deterministic "parameter": the module's positive_output_mask buffer.
    positive_output_mask = jnp.array([True, False, True, False])

    out = bernoulli_gamma_forward(x, positive_output_mask)
    out = jax.block_until_ready(out)

    ref = _reference_forward(x, positive_output_mask)
    assert out.shape == (B, C, H, W)
    assert out.dtype == x.dtype
    assert jnp.allclose(out, ref, rtol=1e-5, atol=1e-6)

    print("KERNEL_OK")
</pallas_src>

<mosaic_0001>
module attributes {stable_mosaic.version = 11 : i64} {
  func.func @_bgo_kernel(%arg0: i32, %arg1: i32, %arg2: memref<8xi32, #tpu.memory_space<smem>>, %arg3: memref<1x1x1x256xf32, #tpu.memory_space<vmem>>, %arg4: memref<1x1x1x256xf32, #tpu.memory_space<vmem>>, %arg5: memref<1x1x1x256xf32, #tpu.memory_space<vmem>>, %arg6: memref<1x1x256xf32, #tpu.memory_space<vmem>>) attributes {dimension_semantics = [#tpu.dimension_semantics<parallel>, #tpu.dimension_semantics<parallel>], iteration_bounds = array<i64: 8, 1>, scalar_prefetch = 1 : i64, scratch_operands = 0 : i64, tpu.core_type = #tpu.core_type<tc>, window_params = [{transform_indices = @transform_0, window_bounds = array<i64: 1, 1, 1, 256>}, {transform_indices = @transform_1, window_bounds = array<i64: 1, 1, 1, 256>}, {transform_indices = @transform_2, window_bounds = array<i64: 1, 1, 1, 256>}, {transform_indices = @transform_3, window_bounds = array<i64: 1, 1, 256>}]} {
    %0 = arith.index_cast %arg0 : i32 to index
    %1 = memref.load %arg2[%0] : memref<8xi32, #tpu.memory_space<smem>>
    %c0_i32 = arith.constant 0 : i32
    %2 = arith.cmpi ne, %1, %c0_i32 : i32
    %3 = arith.extui %2 : i1 to i32
    %c0_i32_0 = arith.constant 0 : i32
    %4 = arith.cmpi ne, %3, %c0_i32_0 : i32
    scf.if %4 {
      %c0 = arith.constant 0 : index
      %c0_3 = arith.constant 0 : index
      %c0_4 = arith.constant 0 : index
      %c0_5 = arith.constant 0 : index
      %8 = vector.load %arg3[%c0, %c0_3, %c0_4, %c0_5] : memref<1x1x1x256xf32, #tpu.memory_space<vmem>>, vector<1x1x1x256xf32>
      %9 = vector.shape_cast %8 : vector<1x1x1x256xf32> to vector<1x256xf32>
      %c0_6 = arith.constant 0 : index
      %c0_7 = arith.constant 0 : index
      %c0_8 = arith.constant 0 : index
      %c0_9 = arith.constant 0 : index
      %10 = vector.load %arg4[%c0_6, %c0_7, %c0_8, %c0_9] : memref<1x1x1x256xf32, #tpu.memory_space<vmem>>, vector<1x1x1x256xf32>
      %11 = vector.shape_cast %10 : vector<1x1x1x256xf32> to vector<1x256xf32>
      %c0_10 = arith.constant 0 : index
      %c0_11 = arith.constant 0 : index
      %c0_12 = arith.constant 0 : index
      %c0_13 = arith.constant 0 : index
      %12 = vector.load %arg5[%c0_10, %c0_11, %c0_12, %c0_13] : memref<1x1x1x256xf32, #tpu.memory_space<vmem>>, vector<1x1x1x256xf32>
      %13 = vector.shape_cast %12 : vector<1x1x1x256xf32> to vector<1x256xf32>
      %cst = arith.constant 0.000000e+00 : f32
      %14 = vector.broadcast %cst : f32 to vector<1x256xf32>
      %15 = arith.subf %14, %9 : vector<1x256xf32>
      %16 = math.exp %15 : vector<1x256xf32>
      %cst_14 = arith.constant 1.000000e+00 : f32
      %17 = vector.broadcast %cst_14 : f32 to vector<1x256xf32>
      %18 = arith.addf %17, %16 : vector<1x256xf32>
      %cst_15 = arith.constant 1.000000e+00 : f32
      %19 = vector.broadcast %cst_15 : f32 to vector<1x256xf32>
      %20 = arith.divf %19, %18 : vector<1x256xf32>
      %21 = arith.subf %11, %13 : vector<1x256xf32>
      %22 = math.exp %21 : vector<1x256xf32>
      %23 = arith.mulf %20, %22 : vector<1x256xf32>
      %cst_16 = arith.constant -20.7232666 : f32
      %24 = vector.broadcast %cst_16 : f32 to vector<1x256xf32>
      %25 = arith.cmpf olt, %9, %24 : vector<1x256xf32>
      %cst_17 = arith.constant 0.000000e+00 : f32
      %26 = vector.broadcast %cst_17 : f32 to vector<1x256xf32>
      %27 = arith.select %25, %26, %23 : vector<1x256xi1>, vector<1x256xf32>
      %c0_18 = arith.constant 0 : index
      %c0_19 = arith.constant 0 : index
      %c0_20 = arith.constant 0 : index
      %28 = vector.load %arg6[%c0_18, %c0_19, %c0_20] : memref<1x1x256xf32, #tpu.memory_space<vmem>>, vector<1x1x256xf32>
      %29 = vector.shape_cast %28 : vector<1x1x256xf32> to vector<1x256xf32>
      %30 = vector.shape_cast %27 : vector<1x256xf32> to vector<1x1x256xf32>
      tpu.vector_store %arg6[%c0_18, %c0_19, %c0_20], %30 {strides = array<i32>} : memref<1x1x256xf32, #tpu.memory_space<vmem>>, vector<1x1x256xf32>,
    } else {
    }
    %c0_i32_1 = arith.constant 0 : i32
    %5 = arith.cmpi eq, %1, %c0_i32_1 : i32
    %6 = arith.extui %5 : i1 to i32
    %c0_i32_2 = arith.constant 0 : i32
    %7 = arith.cmpi ne, %6, %c0_i32_2 : i32
    scf.if %7 {
      %c0 = arith.constant 0 : index
      %c0_3 = arith.constant 0 : index
      %c0_4 = arith.constant 0 : index
      %c0_5 = arith.constant 0 : index
      %8 = vector.load %arg3[%c0, %c0_3, %c0_4, %c0_5] : memref<1x1x1x256xf32, #tpu.memory_space<vmem>>, vector<1x1x1x256xf32>
      %9 = vector.shape_cast %8 : vector<1x1x1x256xf32> to vector<1x256xf32>
      %c0_6 = arith.constant 0 : index
      %c0_7 = arith.constant 0 : index
      %c0_8 = arith.constant 0 : index
      %10 = vector.load %arg6[%c0_6, %c0_7, %c0_8] : memref<1x1x256xf32, #tpu.memory_space<vmem>>, vector<1x1x256xf32>
      %11 = vector.shape_cast %10 : vector<1x1x256xf32> to vector<1x256xf32>
      %12 = vector.shape_cast %9 : vector<1x256xf32> to vector<1x1x256xf32>
      tpu.vector_store %arg6[%c0_6, %c0_7, %c0_8], %12 {strides = array<i32>} : memref<1x1x256xf32, #tpu.memory_space<vmem>>, vector<1x1x256xf32>,
    } else {
    }
    return
  }
  func.func @transform_0(%arg0: i32, %arg1: i32, %arg2: memref<8xi32, #tpu.memory_space<smem>>) -> (i32, i32, i32, i32) {
    %c0_i32 = arith.constant 0 : i32
    %c0_i32_0 = arith.constant 0 : i32
    %c0_i32_1 = arith.constant 0 : i32
    return %arg0, %c0_i32, %arg1, %c0_i32_0 : i32, i32, i32, i32
  }
  func.func @transform_1(%arg0: i32, %arg1: i32, %arg2: memref<8xi32, #tpu.memory_space<smem>>) -> (i32, i32, i32, i32) {
    %0 = arith.index_cast %arg0 : i32 to index
    %1 = memref.load %arg2[%0] : memref<8xi32, #tpu.memory_space<smem>>
    %2 = arith.muli %arg0, %1 : i32
    %3 = arith.index_cast %arg0 : i32 to index
    %4 = memref.load %arg2[%3] : memref<8xi32, #tpu.memory_space<smem>>
    %5 = arith.muli %arg1, %4 : i32
    %c1_i32 = arith.constant 1 : i32
    %c0_i32 = arith.constant 0 : i32
    %c0_i32_0 = arith.constant 0 : i32
    return %2, %c1_i32, %5, %c0_i32 : i32, i32, i32, i32
  }
  func.func @transform_2(%arg0: i32, %arg1: i32, %arg2: memref<8xi32, #tpu.memory_space<smem>>) -> (i32, i32, i32, i32) {
    %0 = arith.index_cast %arg0 : i32 to index
    %1 = memref.load %arg2[%0] : memref<8xi32, #tpu.memory_space<smem>>
    %2 = arith.muli %arg0, %1 : i32
    %3 = arith.index_cast %arg0 : i32 to index
    %4 = memref.load %arg2[%3] : memref<8xi32, #tpu.memory_space<smem>>
    %5 = arith.muli %arg1, %4 : i32
    %c2_i32 = arith.constant 2 : i32
    %c0_i32 = arith.constant 0 : i32
    %c0_i32_0 = arith.constant 0 : i32
    return %2, %c2_i32, %5, %c0_i32 : i32, i32, i32, i32
  }
  func.func @transform_3(%arg0: i32, %arg1: i32, %arg2: memref<8xi32, #tpu.memory_space<smem>>) -> (i32, i32, i32) {
    %c0_i32 = arith.constant 0 : i32
    %c0_i32_0 = arith.constant 0 : i32
    return %arg0, %arg1, %c0_i32 : i32, i32, i32
  }
}

</mosaic_0001>

<bundles_post_ra>
// kernel: tpu_custom_call.1
= control target key start
LH: loop header
LB: loop body
LE: loop exit
PB: predicated region body
PF: predicated region fallthrough
CT: control target
= control target key end

     0   :  { %s1354_s0 = inlined_call_operand.hbm [shape: s32[8], index: 0, kind: input, shape index: {}]   ;;  %s1355_s1 = inlined_call_operand.hbm [shape: f32[8,3,1,256], index: 1, kind: input, shape index: {}]   ;;  %s1356_s2 = inlined_call_operand.hbm [shape: f32[8,3,1,256], index: 2, kind: input, shape index: {}]   ;;  %s1357_s3 = inlined_call_operand.hbm [shape: f32[8,3,1,256], index: 3, kind: input, shape index: {}]   ;;  %s1358_s4 = inlined_call_operand.hbm [shape: f32[8,1,256], index: 4, kind: output, shape index: {}]  }
   0x1   :  { %1374 = sst [smem:[#allocation28_spill]] %s1355_s1  ;;  %s663_s17 = scalar_lea.hbm %s1354_s0, 16 }
   0x2   :  { %1375 = sst [smem:[#allocation29_spill]] %s1356_s2  ;;  %p664_p0 = scmp.ne.s32.totalorder %s1354_s0, %s663_s17 }
   0x3   :  { %1376 = sst [smem:[#allocation30_spill]] %s1358_s4  ;;  %p667_p1 = scmp.lt.u32.totalorder %s663_s17, %s1354_s0 }
   0x5   :  { %p669_p2 = pnand %p667_p1, %p664_p0 }
   0x7   :  { %672 = shalt.err (!%p669_p2)  }
   0x8   :  { %s907_s22 = smov [#allocation3]  }
   0x9   :  { %10 = dma.hbm_to_smem %s1354_s0, 16, %s907_s22, [#allocation2] }
   0xa   :  { %841 = dma.done.wait [#allocation2], 16 }
   0xb   :  { %842 = vsyncadd [#allocation2], 4294967280 }
   0xc   :  { %12 = sfence }
   0xd   :  { %13 = vsyncpa [#allocation5], 0 }
   0xe   :  { %15 = vsyncpa [#allocation5 + $0x1], 0 }
   0xf   :  { %16 = vsyncpa [#allocation8], 0 }
  0x10   :  { %18 = vsyncpa [#allocation8 + $0x1], 0 }
  0x11   :  { %19 = vsyncpa [#allocation6], 0 }
  0x12   :  { %21 = vsyncpa [#allocation6 + $0x1], 0  ;;  %s949_s25 = smov 0   ;;  %s951_s26 = smov 0  }
  0x13   :  { %s953_s27 = smov 0   ;;  %s955_s28 = smov 0  }
  0x14   :  { %s957_s29 = smov 0   ;;  %s959_s0 = smov 0  }
  0x15   :  { %s961_s30 = smov 0   ;;  %s963_s5 = smov 0  }
  0x16   :  { %s965_s6 = smov 0   ;;  %s967_s7 = smov 0  }
  0x17   :  { %s969_s8 = smov 0   ;;  %s971_s9 = smov 0  }
  0x18 LB: > { %1377 = sst [smem:[#allocation20_spill]] %s881_s0  ;;  %s1008_s10 = sadd.s32 4294967295, %s905_s9   ;;  %s905_s9 = sphi %s971_s9, %s27_s9   ;;  %s901_s8 = sphi %s969_s8, %s1434_s8   ;;  %s897_s7 = sphi %s967_s7, %s1433_s7   ;;  %s893_s6 = sphi %s965_s6, %s1424_s6   ;;  %s889_s5 = sphi %s963_s5, %s1432_s5   ;;  %s885_s30 = sphi %s961_s30, %s1431_s30   ;;  %s881_s0 = sphi %s959_s0, %s1422_s0   ;;  %s877_s29 = sphi %s957_s29, %s1430_s29   ;;  %s873_s28 = sphi %s955_s28, %s1429_s28   ;;  %s869_s27 = sphi %s953_s27, %s1428_s27   ;;  %s865_s26 = sphi %s951_s26, %s1427_s26   ;;  %s861_s25 = sphi %s949_s25, %s1426_s25  }
  0x19   : > { %1378 = sst [smem:[#allocation21_spill]] %s885_s30  ;;  %s39_s11 = sadd.s32 1, %s901_s8 }
  0x1a   : > { %1379 = sst [smem:[#allocation22_spill]] %s893_s6  ;;  %p41_p3 = scmp.ge.s32.totalorder %s39_s11, 8 }
  0x1b   : > { %p1360_p4 = scmp.eq.s32.totalorder %s905_s9, 0  ;;  %p1363_p5 = scmp.eq.s32.totalorder %s1008_s10, 0 }
  0x1c   : > { %s71_s12 = sld [smem:[#allocation3 + %s901_s8]]  ;;  %s1436_s11 = smov (%p41_p3, %s39_s11), 0 }
  0x1d   : > { %1380 = sst [smem:[#allocation23_spill]] %s1436_s11  ;;  %s82_s13 = sadd.s32 1, %s881_s0 }
  0x1e   : > { %p89_p6 = scmp.ne.s32.totalorder %s881_s0, %s877_s29  ;;  %s74_s14 = sld [smem:[#allocation3 + %s1436_s11]] }
  0x1f   : > { %p95_p7 = scmp.ne.s32.totalorder %s877_s29, %s873_s28  ;;  %p1361_p10 = scmp.lt.s32.totalorder %s905_s9, 8 }
  0x20   : > { %p1023_p8 = por %p89_p6, %p1360_p4  ;;  %s204_s19 = sand.u32 1, %s881_s0  }
  0x21   : > { %p1029_p9 = por %p95_p7, %p1363_p5  ;;  %s510_s20 = sshll.u32 %s204_s19, 1 }
  0x22   : > { %s72_s17 = smul.u32 %s901_s8, %s71_s12  ;;  %p1041_p11 = pnand %p1361_p10, %p1023_p8 }
  0x23   : > { %s1382_s16 = scalar_select %p1029_p9, 1, 0 }
  0x24   : > { %s75_s22 = smul.u32 %s74_s14, %s1436_s11  ;;  %s206_s28 = scalar_lea.vmem [#allocation7], %s510_s20 }
  0x25   : > { %s529_s23 = scalar_select %p1023_p8, [#allocation3], [#allocation11] }
  0x26   : > { %s77_s24 = ssub.s32 %s72_s17, %s75_s22  ;;  %s220_s12 = sshll.u32 %s206_s28, 4  ;;  %s1048_s12 = int_to_ptr.vmem [resolvable:$true] %s220_s12 }
  0x27   : > { %p80_p12 = scmp.eq.s32.totalorder %s77_s24, 0  ;;  %s1438_s23 = smov (!%p1361_p10, %s529_s23), [#allocation13] }
  0x28   : > { %s530_s19 = scalar_select %p1023_p8, %s901_s8, 0 }
  0x29   : > { %s1054_s18 = scalar_select %p80_p12, %s881_s0, %s82_s13  }
  0x2a   : > { %s1440_s19 = smov (!%p1361_p10, %s530_s19), 0  ;;  %p514_p13 = scmp.ge.s32.totalorder %s905_s9, 1 }
  0x2b   : > { %1384 = sst [smem:[#allocation24_spill]] %s1054_s18  ;;  %p250_p0 = scmp.lt.s32.totalorder %s905_s9, 9 }
  0x2c   : > { %s207_s14 = sld [smem:[%s1438_s23 + %s1440_s19]]  ;;  %s43_s20 = ssub.s32 %s901_s8, %s1436_s11 }
  0x2d   : > { %p1062_p1 = pnand %p514_p13, %p250_p0  ;;  %p46_p2 = scmp.eq.s32.totalorder %s43_s20, 0 }
  0x2e   : > { %s48_s22 = sadd.s32 1, %s893_s6  ;;  %p1362_p3 = scmp.ne.s32.totalorder %s893_s6, %s889_s5 }
  0x2f   : > { %s1385_s17 = scalar_select %p1062_p1, 1, 0 }
  0x30   : > { %s1074_s28 = scalar_select %p46_p2, %s893_s6, %s48_s22  }
  0x31   : > { %s1387_s2 = sld [smem:[#allocation29_spill]]  ;;  %p1084_p6 = por %p1360_p4, %p1362_p3 }
  0x32   : > { %s208_s15 = smul.u32 %s901_s8, %s207_s14  ;;  %1386 = sst [smem:[#allocation25_spill]] %s1074_s28 }
  0x33   : > { %s1389_s14 = sand.u32 1, %s905_s9   ;;  %p675_p12 = pneg %p1041_p11 }
  0x34   : > { %s511_s24 = smul.u32 96, %s208_s15  ;;  %s1094_s15 = scalar_lea.sflag [#allocation8], %s1389_s14 }
  0x37   : > { %s411_s23 = scalar_lea.hbm %s1387_s2, %s511_s24  ;;  %s678_s22 = scalar_lea.hbm %s1387_s2, 768 }
  0x38   : > { %s1088_s13 = scalar_lea.hbm %s411_s23, 32  ;;  %s703_s20 = scalar_lea.hbm %s411_s23, 64 }
  0x39   : > { %p674_p8 = scmp.ne.s32.totalorder %s1088_s13, %s703_s20  ;;  %p679_p2 = scmp.lt.u32.totalorder %s1088_s13, %s1387_s2 }
  0x3a   : > { %p680_p4 = scmp.lt.u32.totalorder %s678_s22, %s703_s20  ;;  %p682_p3 = scmp.lt.u32.totalorder %s703_s20, %s1088_s13 }
  0x3b   : > { %p676_p13 = pnand %p675_p12, %p674_p8 }
  0x3c   : > { %p681_p10 = por %p680_p4, %p679_p2 }
  0x3d   : > { %p677_p0 = pneg %p676_p13 }
  0x3e   : > { %p683_p5 = por %p682_p3, %p681_p10 }
  0x40   : > { %p684_p7 = pnand %p683_p5, %p677_p0 }
  0x42   : > { %687 = shalt.err (!%p684_p7)
}
  0x43   : > { %s688_s23 = scalar_lea.vmem %s1048_s12, 32  ;;  %s908_s14 = smov [#allocation7]  }
  0x44   : > { %p689_p8 = scmp.ne.s32.totalorder %s1048_s12, %s688_s23  ;;  %s693_s0 = sshll.u32 %s908_s14, 4  ;;  %s694_s0 = int_to_ptr.vmem [resolvable:$false] %s693_s0 }
  0x45   : > { %s695_s28 = scalar_lea.vmem %s694_s0, 64  ;;  %p696_p1 = scmp.lt.s32.totalorder %s1048_s12, %s694_s0 }
  0x46   : > { %p691_p13 = pnand %p689_p8, %p675_p12  ;;  %p697_p4 = scmp.lt.s32.totalorder %s695_s28, %s688_s23 }
  0x48   : > { %p692_p9 = pneg %p691_p13  ;;  %p698_p2 = por %p697_p4, %p696_p1 }
  0x4a   : > { %p699_p10 = pnand %p698_p2, %p692_p9 }
  0x4c   : > { %702 = shalt.err (!%p699_p10)
}
  0x4d   : > { %548 = dma.hbm_to_vmem [thread:$0]  (!%p1041_p11), %s1088_s13, 32, %s1048_s12, %s1094_s15  }
  0x4e   : > { %p1390_p5 = scmp.ne.s32.totalorder %s889_s5, %s885_s30  ;;  %p1391_p9 = scmp.eq.s32.totalorder %s1008_s10, 0 }
  0x4f   : > { %p155_p3 = scmp.eq.s32.totalorder %s1008_s10, 7  ;;  %s1393_s20 = sadd.s32 4294967294, %s905_s9  }
  0x50   : > { %p1126_p1 = por %p1391_p9, %p1390_p5  ;;  %p161_p7 = scmp.eq.s32.totalorder %s1393_s20, 7 }
  0x51   : > { %s181_s18 = sand.u32 1, %s893_s6   ;;  %p1394_p12 = scmp.ne.s32.totalorder %s893_s6, %s889_s5 }
  0x52   : > { %p1397_p8 = pmov %p1390_p5  ;;  %s508_s12 = sshll.u32 %s181_s18, 1 }
  0x53   : > { %p1137_p0 = por %p155_p3, %p1394_p12  ;;  %s527_s13 = smul.u32 96, %s901_s8 }
  0x54   : > { %p1144_p13 = por %p161_p7, %p1397_p8  ;;  %s185_s23 = scalar_lea.vmem [#allocation4], %s508_s12 }
  0x55   : > { %s1395_s22 = scalar_select %p1137_p0, 1, 0 }
  0x56   : > { %s1398_s24 = scalar_select %p1144_p13, 1, 0 }
  0x57   : > { %1396 = sst [smem:[#allocation26_spill]] %s1395_s22  ;;  %s195_s14 = sshll.u32 %s185_s23, 4  ;;  %s1162_s14 = int_to_ptr.vmem [resolvable:$true] %s195_s14 }
  0x58   : > { %1399 = sst [smem:[#allocation27_spill]] %s1398_s24  ;;  %p1400_p11 = scmp.lt.s32.totalorder %s905_s9, 8 }
  0x59   : > { %s1402_s1 = sld [smem:[#allocation28_spill]]  ;;  %s182_s12 = scalar_lea.sflag [#allocation5], %s181_s18 }
  0x5a   : > { %p1153_p4 = pnand %p1400_p11, %p1084_p6 }
  0x5c   : > { %p706_p6 = pneg %p1153_p4 }
  0x5f   : > { %s1160_s2 = scalar_lea.hbm %s1402_s1, %s527_s13  ;;  %s709_s13 = scalar_lea.hbm %s1402_s1, 768 }
  0x60   : > { %s704_s19 = scalar_lea.hbm %s1160_s2, 32  ;;  %p710_p9 = scmp.lt.u32.totalorder %s1160_s2, %s1402_s1 }
  0x61   : > { %p705_p2 = scmp.ne.s32.totalorder %s1160_s2, %s704_s19  ;;  %p711_p3 = scmp.lt.u32.totalorder %s709_s13, %s704_s19 }
  0x62   : > { %p713_p12 = scmp.lt.u32.totalorder %s704_s19, %s1160_s2 }
  0x63   : > { %p707_p10 = pnand %p706_p6, %p705_p2  ;;  %p712_p7 = por %p711_p3, %p710_p9 }
  0x65   : > { %p708_p5 = pneg %p707_p10  ;;  %p714_p8 = por %p713_p12, %p712_p7 }
  0x67   : > { %p715_p11 = pnand %p714_p8, %p708_p5 }
  0x69   : > { %718 = shalt.err (!%p715_p11)
}
  0x6a   : > { %s719_s18 = scalar_lea.vmem %s1162_s14, 32  ;;  %s909_s23 = smov [#allocation4]  }
  0x6b   : > { %p720_p2 = scmp.ne.s32.totalorder %s1162_s14, %s719_s18  ;;  %s724_s28 = sshll.u32 %s909_s23, 4  ;;  %s725_s28 = int_to_ptr.vmem [resolvable:$false] %s724_s28 }
  0x6c   : > { %s726_s6 = scalar_lea.vmem %s725_s28, 64  ;;  %p727_p0 = scmp.lt.s32.totalorder %s1162_s14, %s725_s28 }
  0x6d   : > { %p722_p10 = pnand %p720_p2, %p706_p6  ;;  %p728_p9 = scmp.lt.s32.totalorder %s726_s6, %s719_s18 }
  0x6f   : > { %p723_p13 = pneg %p722_p10  ;;  %p729_p3 = por %p728_p9, %p727_p0 }
  0x71   : > { %p730_p7 = pnand %p729_p3, %p723_p13 }
  0x73   : > { %733 = shalt.err (!%p730_p7)
}
  0x74   : > { %543 = dma.hbm_to_vmem [thread:$0]  (!%p1153_p4), %s1160_s2, 32, %s1162_s14, %s182_s12  }
  0x75   : > { %s105_s19 = sld [smem:[#allocation3 + %s901_s8]]  ;;  %p123_p0 = scmp.ne.s32.totalorder %s869_s27, %s865_s26 }
  0x76   : > { %s108_s0 = sld [smem:[#allocation3 + %s1436_s11]]  ;;  %p129_p13 = scmp.ne.s32.totalorder %s865_s26, %s861_s25 }
  0x77   : > { %p1403_p6 = scmp.eq.s32.totalorder %s905_s9, 0  ;;  %p1405_p12 = scmp.eq.s32.totalorder %s1008_s10, 0 }
  0x78   : > { %s116_s12 = sadd.s32 1, %s869_s27  ;;  %s229_s23 = sand.u32 1, %s869_s27  }
  0x79   : > { %p1197_p5 = por %p123_p0, %p1403_p6  ;;  %p1203_p8 = por %p129_p13, %p1405_p12 }
  0x7a   : > { %p1407_p11 = scmp.lt.s32.totalorder %s905_s9, 8 }
  0x7b   : > { %s1406_s20 = scalar_select %p1203_p8, 1, 0 }
  0x7c   : > { %s106_s2 = smul.u32 %s901_s8, %s105_s19  ;;  %p1217_p2 = pnand %p1407_p11, %p1197_p5 }
  0x7d   : > { %s109_s14 = smul.u32 %s108_s0, %s1436_s11  ;;  %p1409_p10 = pmov %p1407_p11 }
  0x7e   : > { %s532_s18 = scalar_select %p1197_p5, [#allocation3], [#allocation12] }
  0x7f   : > { %s111_s25 = ssub.s32 %s106_s2, %s109_s14  ;;  %p1410_p9 = pmov %p1409_p10 }
  0x80   : > { %p114_p4 = scmp.eq.s32.totalorder %s111_s25, 0  ;;  %s1442_s18 = smov (!%p1409_p10, %s532_s18), [#allocation14] }
  0x81   : > { %s533_s6 = scalar_select %p1197_p5, %s901_s8, 0 }
  0x82   : > { %s1225_s1 = scalar_select %p114_p4, %s869_s27, %s116_s12  }
  0x83   : > { %s1444_s6 = smov (!%p1410_p9, %s533_s6), 0  ;;  %s512_s19 = sshll.u32 %s229_s23, 1 }
  0x84   : > { %s232_s0 = sld [smem:[%s1442_s18 + %s1444_s6]]  ;;  %s231_s14 = scalar_lea.vmem [#allocation9], %s512_s19 }
  0x85   : > { %s245_s25 = sshll.u32 %s231_s14, 4  ;;  %p736_p7 = pneg %p1217_p2  ;;  %s1232_s25 = int_to_ptr.vmem [resolvable:$true] %s245_s25 }
  0x86   : > { %s739_s23 = scalar_lea.hbm %s1357_s3, 768 }
  0x8a   : > { %s233_s2 = smul.u32 %s901_s8, %s232_s0 }
  0x8c   : > { %s513_s11 = smul.u32 96, %s233_s2 }
  0x8e   : > { %s420_s13 = scalar_lea.hbm %s1357_s3, %s513_s11 }
  0x8f   : > { %s421_s4 = scalar_lea.hbm %s420_s13, 64  ;;  %s764_s22 = scalar_lea.hbm %s420_s13, 96 }
  0x90   : > { %p735_p3 = scmp.ne.s32.totalorder %s421_s4, %s764_s22  ;;  %p740_p6 = scmp.lt.u32.totalorder %s421_s4, %s1357_s3 }
  0x91   : > { %p741_p5 = scmp.lt.u32.totalorder %s739_s23, %s764_s22  ;;  %p743_p4 = scmp.lt.u32.totalorder %s764_s22, %s421_s4 }
  0x92   : > { %p737_p0 = pnand %p736_p7, %p735_p3 }
  0x93   : > { %p742_p12 = por %p741_p5, %p740_p6 }
  0x94   : > { %p738_p13 = pneg %p737_p0 }
  0x95   : > { %p744_p11 = por %p743_p4, %p742_p12 }
  0x97   : > { %p745_p10 = pnand %p744_p11, %p738_p13 }
  0x99   : > { %748 = shalt.err (!%p745_p10)
}
  0x9a   : > { %s749_s30 = scalar_lea.vmem %s1232_s25, 32  ;;  %s910_s11 = smov [#allocation9]  }
  0x9b   : > { %p750_p9 = scmp.ne.s32.totalorder %s1232_s25, %s749_s30  ;;  %s754_s24 = sshll.u32 %s910_s11, 4  ;;  %s755_s24 = int_to_ptr.vmem [resolvable:$false] %s754_s24 }
  0x9c   : > { %s756_s0 = scalar_lea.vmem %s755_s24, 64  ;;  %p757_p8 = scmp.lt.s32.totalorder %s1232_s25, %s755_s24 }
  0x9d   : > { %p752_p3 = pnand %p750_p9, %p736_p7  ;;  %p758_p6 = scmp.lt.s32.totalorder %s756_s0, %s749_s30 }
  0x9f   : > { %p753_p0 = pneg %p752_p3  ;;  %p759_p5 = por %p758_p6, %p757_p8 }
  0xa1   : > { %p760_p12 = pnand %p759_p5, %p753_p0 }
  0xa3   : > { %763 = shalt.err (!%p760_p12)
}
  0xa4   : > { %553 = dma.hbm_to_vmem [thread:$0]  (!%p1217_p2), %s421_s4, 32, %s1232_s25, %s1094_s15  }
  0xa5   : > { %p1411_p13 = scmp.ne.s32.totalorder %s1385_s17, 0 }
  0xa6   : > { %s1261_s22 = sand.u32 (!%p1411_p13), 1, %s889_s5  }
  0xa7   : > { %254 = sbr.rel (%p1411_p13) target bundleno = 260 (0x104), region = 32  ;;  %s515_s2 = sshll.u32 (!%p1411_p13), %s1261_s22, 1 }
  0xa8   : > { %s257_s14 = scalar_lea.sflag (!%p1411_p13), [#allocation5], %s1261_s22  ;;  %s1265_s13 = scalar_lea.vmem (!%p1411_p13), [#allocation4], %s515_s2 }
  0xae   : > { %844 = dma.done.wait (%p1126_p1), %s257_s14, 32  }
  0xaf   : > { %846 = vsyncadd (%p1126_p1), %s257_s14, 4294967264  ;;  %s265_s4 = sand.u32 1, %s1008_s10   ;;  %s267_s17 = sand.u32 1, %s877_s29  }
  0xb0   : > { %s516_s15 = sshll.u32 %s267_s17, 1  ;;  %s266_s28 = scalar_lea.sflag [#allocation8], %s265_s4 }
  0xb1   : > { %s269_s25 = scalar_lea.vmem [#allocation7], %s516_s15  ;;  %p1412_p8 = scmp.ne.s32.totalorder %s1382_s16, 0 }
  0xb3   : > { %848 = dma.done.wait (%p1412_p8), %s266_s28, 32  }
  0xb4   : > { %850 = vsyncadd (%p1412_p8), %s266_s28, 4294967264  ;;  %s276_s12 = sand.u32 1, %s865_s26   ;;  %p1413_p2 = scmp.ne.s32.totalorder %s1406_s20, 0 }
  0xb5   : > { %s517_s18 = sshll.u32 %s276_s12, 1 }
  0xb6   : > { %s278_s23 = scalar_lea.vmem [#allocation9], %s517_s18 }
  0xb7   : > { %852 = dma.done.wait (%p1413_p2), %s266_s28, 32  }
  0xb8   : > { %854 = vsyncadd (%p1413_p2), %s266_s28, 4294967264  ;;  %s317_s10 = sld [smem:[#allocation3 + %s897_s7]]  ;;  %s1283_s21 = scalar_lea.vmem [#allocation10], %s515_s2 }
  0xbe   : > { %p519_p1 = scmp.eq.s32.totalorder %s317_s10, 0 }
  0xbf   : > { %v322_v0 = vld [vmem:[%s1265_s13] sm:$0x3] (!%p519_p1)  ;;  %v323_v3 = vld [vmem:[%s269_s25] sm:$0x3] (!%p519_p1)  ;;  %v324_v4 = vld [vmem:[%s278_s23] sm:$0x3] (!%p519_p1)  ;;  %v337_v9 = vlaneseq (!%p519_p1) }
  0xc0   : > { %321 = sbr.rel (%p519_p1) target bundleno = 224 (0xe0), region = 48  ;;  %v325_v1 = vsub.f32 (!%p519_p1), 0.0, %v322_v0  ;;  %v331_v5 = vsub.f32 (!%p519_p1), %v323_v3, %v324_v4  ;;  %vm335_vm0 = vcmp.lt.f32.partialorder (!%p519_p1), %v322_v0, -20.723267 }
  0xc1   : > { %vm339_vm1 = vcmp.lt.s32.totalorder (!%p519_p1), %v337_v9, 256 }
  0xc2   : > { %v326_v2 = vmul.f32 (!%p519_p1), 1.442695, %v325_v1  ;;  %v332_v6 = vmul.f32 (!%p519_p1), 1.442695, %v331_v5 }
  0xc4   : > { %657 = vpow2.f32 (!%p519_p1), %v326_v2 }
  0xc5   : > { %659 = vpow2.f32 (!%p519_p1), %v332_v6 }
  0xce   : > { %v658_v7 = vpop.eup %657 }
  0xcf   : > { %v328_v8 = vadd.f32 1.0, %v658_v7  ;;  %v660_v10 = vpop.eup %659 }
  0xd1   : > { %661 = vrcp.f32 %v328_v8 }
  0xdb   : > { %v662_v11 = vpop.eup %661 }
  0xdc   : > { %v334_v12 = vmul.f32 %v662_v11, %v660_v10 }
  0xde   : > { %v336_v13 = vsel %vm335_vm0, 0.0, %v334_v12 }
  0xdf   : > { %341 = vst.msk [vmem:[%s1283_s21] sm:$0x3] %vm339_vm1, %v336_v13 }
  0xe0 PF: > { %p520_p7 = scmp.ne.s32.totalorder %s317_s10, 0 }
  0xe1   : > { %v346_v14 = vld [vmem:[%s1265_s13] sm:$0x3] (!%p520_p7)  ;;  %v347_v15 = vlaneseq (!%p520_p7) }
  0xe2   : > { %345 = sbr.rel (%p520_p7) target bundleno = 233 (0xe9), region = 52 }
  0xe3   : > { %vm349_vm2 = vcmp.lt.s32.totalorder (!%p520_p7), %v347_v15, 256 }
  0xe4   : > { %351 = vst.msk [vmem:[%s1283_s21] sm:$0x3] (!%p520_p7), %vm349_vm2, %v346_v14 }
  0xe9 PF: > { %s1414_s16 = sld [smem:[#allocation26_spill]]  ;;  %s526_s20 = sshll.u32 %s897_s7, 5 }
  0xea   : > { %s1415_s30 = sld [smem:[#allocation30_spill]]  ;;  %s369_s0 = sshll.u32 %s1283_s21, 4  ;;  %s370_s0 = int_to_ptr.vmem [resolvable:$true] %s369_s0 }
  0xeb   : > { %s353_s2 = scalar_lea.sflag [#allocation6], %s1261_s22  ;;  %s765_s14 = scalar_lea.vmem %s370_s0, 32 }
  0xec   : > { %p766_p4 = scmp.ne.s32.totalorder %s370_s0, %s765_s14  ;;  %s911_s13 = smov [#allocation10]  }
  0xed   : > { %s769_s4 = sshll.u32 %s911_s13, 4  ;;  %s770_s4 = int_to_ptr.vmem [resolvable:$false] %s769_s4 }
  0xee   : > { %s771_s17 = scalar_lea.vmem %s770_s4, 64  ;;  %p772_p3 = scmp.lt.s32.totalorder %s370_s0, %s770_s4 }
  0xef   : > { %p1417_p11 = scmp.ne.s32.totalorder %s1414_s16, 0  ;;  %p773_p0 = scmp.lt.s32.totalorder %s771_s17, %s765_s14 }
  0xf0   : > { %s1416_s11 = smov %s1415_s30  ;;  %s1293_s24 = scalar_lea.hbm %s1415_s30, %s526_s20 }
  0xf1   : > { %p767_p10 = pnand %p766_p4, %p1417_p11  ;;  %p774_p6 = por %p773_p0, %p772_p3 }
  0xf3   : > { %p768_p9 = pneg %p767_p10 }
  0xf5   : > { %p775_p5 = pnand %p774_p6, %p768_p9 }
  0xf7   : > { %778 = shalt.err (!%p775_p5)
}
  0xf8   : > { %s779_s7 = scalar_lea.hbm %s1293_s24, 32  ;;  %s783_s28 = scalar_lea.hbm %s1416_s11, 256 }
  0xf9   : > { %p780_p12 = scmp.ne.s32.totalorder %s1293_s24, %s779_s7  ;;  %p784_p2 = scmp.lt.u32.totalorder %s1293_s24, %s1416_s11 }
  0xfa   : > { %p785_p1 = scmp.lt.u32.totalorder %s783_s28, %s779_s7  ;;  %p787_p4 = scmp.lt.u32.totalorder %s779_s7, %s1293_s24 }
  0xfb   : > { %p781_p13 = pnand %p780_p12, %p1417_p11 }
  0xfc   : > { %p786_p7 = por %p785_p1, %p784_p2 }
  0xfd   : > { %p782_p8 = pneg %p781_p13 }
  0xfe   : > { %p788_p10 = por %p787_p4, %p786_p7 }
 0x100   : > { %p789_p9 = pnand %p788_p10, %p782_p8 }
 0x102   : > { %792 = shalt.err (!%p789_p9)
}
 0x103   : > { %538 = dma.vmem_to_hbm [thread:$0]  (%p1417_p11), %s370_s0, 32, %s1293_s24, %s353_s2  }
 0x104 PF: > { %s1418_s18 = sld [smem:[#allocation21_spill]]  ;;  %s1419_s23 = sld [smem:[#allocation27_spill]] }
 0x105   : > { %p559_p3 = scmp.ge.s32.totalorder %s905_s9, 2 }
 0x10a   : > { %s381_s10 = sand.u32 1, %s1418_s18   ;;  %p1420_p0 = scmp.ne.s32.totalorder %s1419_s23, 0 }
 0x10b   : > { %s382_s21 = scalar_lea.sflag [#allocation6], %s381_s10 }
 0x10c   : > { %p555_p6 = pnand %p559_p3, %p1420_p0 }
 0x10e   : > { %856 = dma.done.wait (!%p555_p6), %s382_s21, 32  }
 0x10f   : > { %858 = vsyncadd (!%p555_p6), %s382_s21, 4294967264  ;;  %s27_s9 = sadd.s32 1, %s905_s9   ;;  %s1421_s16 = sld [smem:[#allocation20_spill]] }
 0x110   : > { %p24_p5 = scmp.ge.s32.totalorder %s27_s9, 10   ;;  %s1422_s0 = sld [smem:[#allocation24_spill]] }
 0x111   : > { %s1423_s20 = sld [smem:[#allocation22_spill]]  ;;  %s1424_s6 = sld [smem:[#allocation25_spill]] }
 0x112   : > { %s1425_s19 = sld [smem:[#allocation23_spill]]  ;;  %s1426_s25 = smov %s865_s26 }
 0x113   : > { %s1427_s26 = smov %s869_s27  ;;  %s1428_s27 = smov %s1225_s1 }
 0x114   : > { %s1429_s28 = smov %s877_s29  ;;  %s1431_s30 = smov %s889_s5 }
 0x115   : > { %s1430_s29 = smov %s1421_s16  ;;  %s1433_s7 = smov %s901_s8 }
 0x116   :  { %26 = sbr.rel (!%p24_p5) target bundleno = 24 (0x18), region = 109 }
 0x117   : > { %s1432_s5 = smov %s1423_s20 }
 0x118   : > { %s1434_s8 = smov %s1425_s19 }
 0x11d   :  { %387 = vsyncpa [#allocation5], 1 }
 0x11e   :  { %389 = vsyncpa [#allocation5 + $0x1], 1 }
 0x11f   :  { %390 = vsyncpa [#allocation8], 1 }
 0x120   :  { %392 = vsyncpa [#allocation8 + $0x1], 1 }
 0x121   :  { %393 = vsyncpa [#allocation6], 1 }
 0x122   :  { %395 = vsyncpa [#allocation6 + $0x1], 1 }

</bundles_post_ra>
